<compile_context>
chip_gen: v7x
topology: tpu7x:2x2x1
jax: 0.10.0
libtpu: 0.0.40
codegen_flags: <defaults>
</compile_context>

<pallas_src>
import jax
import jax.numpy as jnp
import numpy as np
from jax.experimental import pallas as pl
from jax.experimental.pallas import tpu as pltpu

# Problem sizes (small, consistent with the module's forward).
B, CIN, H, W = 2, 4, 16, 16
CHID, COUT = 8, 1
HW = H * W

NG = 2 * B                 # encoder groups: (image, batch) pairs        -> 4
SUB = NG * CIN             # sublanes per im2col tap block               -> 16
ER = NG * CHID             # encoder matmul output rows                  -> 32
DR = B * COUT              # decoder matmul output rows                  -> 2
K = 9 * SUB                # im2col contraction depth (both convs)       -> 144
# Encoder (NG groups of CIN) and decoder (B groups of CHID) share one patch
# scratch; this requires the two per-tap block heights to coincide.
assert B * CHID == SUB

_TAPS = [(dy, dx) for dy in range(3) for dx in range(3)]   # t = dy*3 + dx


def _make_border_masks():
    """mask[t, :, m] = 1.0 iff output pixel m has an in-image tap t (zero pad).

    Pre-expanded over all SUB sublanes on the host so the kernel never has to
    broadcast a 1-sublane row."""
    ii, jj = np.meshgrid(np.arange(H), np.arange(W), indexing="ij")
    ii = ii.reshape(-1)
    jj = jj.reshape(-1)
    m = np.zeros((9, SUB, HW), np.float32)
    for t, (dy, dx) in enumerate(_TAPS):
        ok = ((ii + dy - 1 >= 0) & (ii + dy - 1 < H) &
              (jj + dx - 1 >= 0) & (jj + dx - 1 < W))
        m[t, :, :] = ok.astype(np.float32)[None, :]
    return m


_MASKS_NP = _make_border_masks()


def pack_params(w_enc, b_enc, w_dec, b_dec):
    """Pack both convs into one (ER+DR, K+1) block-diagonal matmul constant.

    Rows 0:ER           = encoder weight, one (CHID, CIN) block per (tap, group)
    Rows ER:ER+DR       = decoder weight, one (COUT, CHID) block per (tap, batch)
    Column K (the last) = biases, matched by the ones-row in the patch matrix.
    """
    w_enc = np.asarray(w_enc)
    b_enc = np.asarray(b_enc)
    w_dec = np.asarray(w_dec)
    b_dec = np.asarray(b_dec)
    we_t = np.transpose(w_enc, (0, 1, 3, 2)).reshape(9, CHID, CIN)   # [t, o, c]
    wd_t = np.transpose(w_dec, (0, 1, 3, 2)).reshape(9, COUT, CHID)  # [t, o, c]
    params = np.zeros((ER + DR, K + 1), np.float32)
    for t in range(9):
        for g in range(NG):           # same encoder weight for every (img, b)
            params[g * CHID:(g + 1) * CHID,
                   t * SUB + g * CIN: t * SUB + (g + 1) * CIN] = we_t[t]
        for b in range(B):            # same decoder weight for every batch
            params[ER + b * COUT: ER + (b + 1) * COUT,
                   t * SUB + b * CHID: t * SUB + (b + 1) * CHID] = wd_t[t]
    params[:ER, K] = np.tile(b_enc, NG)
    params[ER:, K] = np.tile(b_dec, B)
    return jnp.asarray(params)


def change_kernel(x1_ref, x2_ref, mask_ref, w_ref, o_ref, patch_ref):
    # Constant ones-row: turns the bias column of w_ref into plain matmul work.
    patch_ref[K:K + 1, :] = jnp.ones((1, HW), jnp.float32)

    # (16, 256): sublane groups [img1_b0 | img1_b1 | img2_b0 | img2_b1], each
    # group = CIN channels.  Tile-aligned (8-row) concat, fully packed vregs.
    x12 = jnp.concatenate([x1_ref[...], x2_ref[...]], axis=0)

    def im2col(src):
        # One 3x3 conv = one matmul over 9 lane-rolled, border-masked copies.
        # Rolls never mix batches/images (those live on sublanes), and every
        # in-image tap keeps the flattened pixel index inside [0, HW), so the
        # wrap-around of pltpu.roll only ever lands on mask==0 positions.
        for t, (dy, dx) in enumerate(_TAPS):
            off = (dy - 1) * W + (dx - 1)
            if off == 0:                                   # center tap: no
                patch_ref[t * SUB:(t + 1) * SUB, :] = src  # roll, no mask
            else:
                patch_ref[t * SUB:(t + 1) * SUB, :] = (
                    pltpu.roll(src, (-off) % HW, axis=1) * mask_ref[t])

    # encode(image1) & encode(image2), both batch items: ONE MXU matmul.
    im2col(x12)
    z12 = jnp.maximum(
        jnp.dot(w_ref[0:ER, :], patch_ref[...],
                preferred_element_type=jnp.float32), 0.0)          # (32, 256)

    # z_diff = |z1 - z2|: sublane-half subtraction (rows 0:16 vs 16:32).
    zd = jnp.abs(z12[0:SUB, :] - z12[SUB:2 * SUB, :])              # (16, 256)

    # decode(z_diff), both batch items: ONE MXU matmul (scratch reused; the
    # ones-row at K is still intact so the decoder bias comes along for free).
    im2col(zd)
    logits = jnp.dot(w_ref[ER:ER + DR, :], patch_ref[...],
                     preferred_element_type=jnp.float32)           # (2, 256)

    # sigmoid(x) = 0.5 + 0.5 * tanh(x / 2): single EUP transcendental.
    o_ref[...] = (0.5 + 0.5 * jnp.tanh(0.5 * logits)).astype(o_ref.dtype)


@jax.jit
def change_detector(image1_nchw, image2_nchw, params, masks):
    """Pallas forward. Inputs NCHW (B, CIN, H, W); output (B, 1, H, W)."""
    # NCHW is channels-major: collapsing (B,CIN) and (H,W) are free metadata
    # reshapes (no transpose, no pad, no extra XLA kernels).
    x1 = image1_nchw.reshape(B * CIN, HW)   # rows = [b0_c0..3, b1_c0..3]
    x2 = image2_nchw.reshape(B * CIN, HW)

    out = pl.pallas_call(
        change_kernel,
        out_shape=jax.ShapeDtypeStruct((B, HW), jnp.float32),
        grid=(1,),   # single step: batch folded onto sublanes (see header)
        in_specs=[
            pl.BlockSpec((B * CIN, HW), lambda i: (0, 0)),
            pl.BlockSpec((B * CIN, HW), lambda i: (0, 0)),
            pl.BlockSpec((9, SUB, HW), lambda i: (0, 0, 0)),
            pl.BlockSpec((ER + DR, K + 1), lambda i: (0, 0)),
        ],
        out_specs=pl.BlockSpec((B, HW), lambda i: (0, 0)),
        scratch_shapes=[pltpu.VMEM((K + 1, HW), jnp.float32)],  # shared patches
        compiler_params=pltpu.CompilerParams(
            dimension_semantics=("arbitrary",)),
    )(x1, x2, masks, params)

    return out.reshape(B, 1, H, W)          # free reshape (row-major)


# ----------------------------- pure-JAX reference -----------------------------
def _conv3x3_ref(x_nhwc, w, b):
    Bb, Hh, Ww, cin = x_nhwc.shape
    cout = w.shape[-1]
    xp = jnp.pad(x_nhwc, ((0, 0), (1, 1), (1, 1), (0, 0)))
    acc = jnp.zeros((Bb, Hh, Ww, cout), jnp.float32)
    for dy in range(3):
        for dx in range(3):
            acc = acc + jnp.einsum(
                'bhwc,co->bhwo', xp[:, dy:dy + Hh, dx:dx + Ww, :], w[dy, dx],
                precision=jax.lax.Precision.HIGHEST)
    return acc + b.reshape(1, 1, 1, cout)


def change_detector_ref(img1_nchw, img2_nchw, w_enc, b_enc, w_dec, b_dec):
    x1 = jnp.transpose(img1_nchw, (0, 2, 3, 1))
    x2 = jnp.transpose(img2_nchw, (0, 2, 3, 1))
    z1 = jnp.maximum(_conv3x3_ref(x1, w_enc, b_enc), 0.0)
    z2 = jnp.maximum(_conv3x3_ref(x2, w_enc, b_enc), 0.0)
    zd = jnp.abs(z1 - z2)
    logits = _conv3x3_ref(zd, w_dec, b_dec)
    out = 1.0 / (1.0 + jnp.exp(-logits))
    return jnp.transpose(out, (0, 3, 1, 2))


if __name__ == "__main__":
    key = jax.random.PRNGKey(0)
    k1, k2, k3, k4, k5, k6 = jax.random.split(key, 6)

    # Deterministic synthetic feature-extractor parameters (HWIO conv layout).
    w_enc = jax.random.normal(k1, (3, 3, CIN, CHID), jnp.float32) * 0.2
    b_enc = jax.random.normal(k2, (CHID,), jnp.float32) * 0.1
    w_dec = jax.random.normal(k3, (3, 3, CHID, COUT), jnp.float32) * 0.2
    b_dec = jax.random.normal(k4, (COUT,), jnp.float32) * 0.1

    # Kernel-layout constants, prepared once at init time.
    params = pack_params(w_enc, b_enc, w_dec, b_dec)     # (34, 145)
    masks = jnp.asarray(_MASKS_NP)                       # (9, 16, 256)

    # Deterministic example inputs (PyTorch-style NCHW).
    image1 = jax.random.normal(k5, (B, CIN, H, W), jnp.float32)
    image2 = jax.random.normal(k6, (B, CIN, H, W), jnp.float32)

    out = jax.block_until_ready(change_detector(image1, image2, params, masks))
    ref = jax.block_until_ready(
        change_detector_ref(image1, image2, w_enc, b_enc, w_dec, b_dec))

    assert out.shape == (B, 1, H, W), out.shape
    np.testing.assert_allclose(np.asarray(out), np.asarray(ref),
                               rtol=2e-3, atol=2e-3)
    print("KERNEL_OK")
</pallas_src>

<mosaic_0001>
module attributes {stable_mosaic.version = 11 : i64} {
  func.func @change_kernel(%arg0: i32, %arg1: memref<8x256xf32, #tpu.memory_space<vmem>>, %arg2: memref<8x256xf32, #tpu.memory_space<vmem>>, %arg3: memref<9x16x256xf32, #tpu.memory_space<vmem>>, %arg4: memref<34x145xf32, #tpu.memory_space<vmem>>, %arg5: memref<2x256xf32, #tpu.memory_space<vmem>>, %arg6: memref<145x256xf32, #tpu.memory_space<vmem>>) attributes {dimension_semantics = [#tpu.dimension_semantics<arbitrary>], iteration_bounds = array<i64: 1>, scalar_prefetch = 0 : i64, scratch_operands = 1 : i64, tpu.core_type = #tpu.core_type<tc>, window_params = [{pipeline_mode = #tpu.pipeline_mode<synchronous>, transform_indices = @transform_0, window_bounds = array<i64: 8, 256>}, {pipeline_mode = #tpu.pipeline_mode<synchronous>, transform_indices = @transform_1, window_bounds = array<i64: 8, 256>}, {pipeline_mode = #tpu.pipeline_mode<synchronous>, transform_indices = @transform_2, window_bounds = array<i64: 9, 16, 256>}, {pipeline_mode = #tpu.pipeline_mode<synchronous>, transform_indices = @transform_3, window_bounds = array<i64: 34, 145>}, {pipeline_mode = #tpu.pipeline_mode<synchronous>, transform_indices = @transform_4, window_bounds = array<i64: 2, 256>}]} {
    %cst = arith.constant 1.000000e+00 : f32
    %0 = vector.broadcast %cst : f32 to vector<1x256xf32>
    %c144 = arith.constant 144 : index
    %c0 = arith.constant 0 : index
    %1 = vector.load %arg6[%c144, %c0] : memref<145x256xf32, #tpu.memory_space<vmem>>, vector<1x256xf32>
    tpu.vector_store %arg6[%c144, %c0], %0 {strides = array<i32>} : memref<145x256xf32, #tpu.memory_space<vmem>>, vector<1x256xf32>,
    %c0_0 = arith.constant 0 : index
    %c0_1 = arith.constant 0 : index
    %2 = vector.load %arg1[%c0_0, %c0_1] : memref<8x256xf32, #tpu.memory_space<vmem>>, vector<8x256xf32>
    %c0_2 = arith.constant 0 : index
    %c0_3 = arith.constant 0 : index
    %3 = vector.load %arg2[%c0_2, %c0_3] : memref<8x256xf32, #tpu.memory_space<vmem>>, vector<8x256xf32>
    %4 = tpu.concatenate %2, %3 in 0 : vector<8x256xf32>, vector<8x256xf32> -> vector<16x256xf32>
    %c17_i32 = arith.constant 17 : i32
    %5 = tpu.dynamic_rotate %4 by %c17_i32 dim 1 : vector<16x256xf32>, i32 -> vector<16x256xf32>
    %c0_4 = arith.constant 0 : index
    %c0_5 = arith.constant 0 : index
    %c0_6 = arith.constant 0 : index
    %6 = vector.load %arg3[%c0_4, %c0_5, %c0_6] : memref<9x16x256xf32, #tpu.memory_space<vmem>>, vector<1x16x256xf32>
    %7 = vector.shape_cast %6 : vector<1x16x256xf32> to vector<16x256xf32>
    %8 = arith.mulf %5, %7 : vector<16x256xf32>
    %c0_7 = arith.constant 0 : index
    %c0_8 = arith.constant 0 : index
    %9 = vector.load %arg6[%c0_7, %c0_8] : memref<145x256xf32, #tpu.memory_space<vmem>>, vector<16x256xf32>
    tpu.vector_store %arg6[%c0_7, %c0_8], %8 {strides = array<i32>} : memref<145x256xf32, #tpu.memory_space<vmem>>, vector<16x256xf32>,
    %c16_i32 = arith.constant 16 : i32
    %10 = tpu.dynamic_rotate %4 by %c16_i32 dim 1 : vector<16x256xf32>, i32 -> vector<16x256xf32>
    %c1 = arith.constant 1 : index
    %c0_9 = arith.constant 0 : index
    %c0_10 = arith.constant 0 : index
    %11 = vector.load %arg3[%c1, %c0_9, %c0_10] : memref<9x16x256xf32, #tpu.memory_space<vmem>>, vector<1x16x256xf32>
    %12 = vector.shape_cast %11 : vector<1x16x256xf32> to vector<16x256xf32>
    %13 = arith.mulf %10, %12 : vector<16x256xf32>
    %c16 = arith.constant 16 : index
    %c0_11 = arith.constant 0 : index
    %14 = vector.load %arg6[%c16, %c0_11] : memref<145x256xf32, #tpu.memory_space<vmem>>, vector<16x256xf32>
    tpu.vector_store %arg6[%c16, %c0_11], %13 {strides = array<i32>} : memref<145x256xf32, #tpu.memory_space<vmem>>, vector<16x256xf32>,
    %c15_i32 = arith.constant 15 : i32
    %15 = tpu.dynamic_rotate %4 by %c15_i32 dim 1 : vector<16x256xf32>, i32 -> vector<16x256xf32>
    %c2 = arith.constant 2 : index
    %c0_12 = arith.constant 0 : index
    %c0_13 = arith.constant 0 : index
    %16 = vector.load %arg3[%c2, %c0_12, %c0_13] : memref<9x16x256xf32, #tpu.memory_space<vmem>>, vector<1x16x256xf32>
    %17 = vector.shape_cast %16 : vector<1x16x256xf32> to vector<16x256xf32>
    %18 = arith.mulf %15, %17 : vector<16x256xf32>
    %c32 = arith.constant 32 : index
    %c0_14 = arith.constant 0 : index
    %19 = vector.load %arg6[%c32, %c0_14] : memref<145x256xf32, #tpu.memory_space<vmem>>, vector<16x256xf32>
    tpu.vector_store %arg6[%c32, %c0_14], %18 {strides = array<i32>} : memref<145x256xf32, #tpu.memory_space<vmem>>, vector<16x256xf32>,
    %c1_i32 = arith.constant 1 : i32
    %20 = tpu.dynamic_rotate %4 by %c1_i32 dim 1 : vector<16x256xf32>, i32 -> vector<16x256xf32>
    %c3 = arith.constant 3 : index
    %c0_15 = arith.constant 0 : index
    %c0_16 = arith.constant 0 : index
    %21 = vector.load %arg3[%c3, %c0_15, %c0_16] : memref<9x16x256xf32, #tpu.memory_space<vmem>>, vector<1x16x256xf32>
    %22 = vector.shape_cast %21 : vector<1x16x256xf32> to vector<16x256xf32>
    %23 = arith.mulf %20, %22 : vector<16x256xf32>
    %c48 = arith.constant 48 : index
    %c0_17 = arith.constant 0 : index
    %24 = vector.load %arg6[%c48, %c0_17] : memref<145x256xf32, #tpu.memory_space<vmem>>, vector<16x256xf32>
    tpu.vector_store %arg6[%c48, %c0_17], %23 {strides = array<i32>} : memref<145x256xf32, #tpu.memory_space<vmem>>, vector<16x256xf32>,
    %c64 = arith.constant 64 : index
    %c0_18 = arith.constant 0 : index
    %25 = vector.load %arg6[%c64, %c0_18] : memref<145x256xf32, #tpu.memory_space<vmem>>, vector<16x256xf32>
    tpu.vector_store %arg6[%c64, %c0_18], %4 {strides = array<i32>} : memref<145x256xf32, #tpu.memory_space<vmem>>, vector<16x256xf32>,
    %c255_i32 = arith.constant 255 : i32
    %26 = tpu.dynamic_rotate %4 by %c255_i32 dim 1 : vector<16x256xf32>, i32 -> vector<16x256xf32>
    %c5 = arith.constant 5 : index
    %c0_19 = arith.constant 0 : index
    %c0_20 = arith.constant 0 : index
    %27 = vector.load %arg3[%c5, %c0_19, %c0_20] : memref<9x16x256xf32, #tpu.memory_space<vmem>>, vector<1x16x256xf32>
    %28 = vector.shape_cast %27 : vector<1x16x256xf32> to vector<16x256xf32>
    %29 = arith.mulf %26, %28 : vector<16x256xf32>
    %c80 = arith.constant 80 : index
    %c0_21 = arith.constant 0 : index
    %30 = vector.load %arg6[%c80, %c0_21] : memref<145x256xf32, #tpu.memory_space<vmem>>, vector<16x256xf32>
    tpu.vector_store %arg6[%c80, %c0_21], %29 {strides = array<i32>} : memref<145x256xf32, #tpu.memory_space<vmem>>, vector<16x256xf32>,
    %c241_i32 = arith.constant 241 : i32
    %31 = tpu.dynamic_rotate %4 by %c241_i32 dim 1 : vector<16x256xf32>, i32 -> vector<16x256xf32>
    %c6 = arith.constant 6 : index
    %c0_22 = arith.constant 0 : index
    %c0_23 = arith.constant 0 : index
    %32 = vector.load %arg3[%c6, %c0_22, %c0_23] : memref<9x16x256xf32, #tpu.memory_space<vmem>>, vector<1x16x256xf32>
    %33 = vector.shape_cast %32 : vector<1x16x256xf32> to vector<16x256xf32>
    %34 = arith.mulf %31, %33 : vector<16x256xf32>
    %c96 = arith.constant 96 : index
    %c0_24 = arith.constant 0 : index
    %35 = vector.load %arg6[%c96, %c0_24] : memref<145x256xf32, #tpu.memory_space<vmem>>, vector<16x256xf32>
    tpu.vector_store %arg6[%c96, %c0_24], %34 {strides = array<i32>} : memref<145x256xf32, #tpu.memory_space<vmem>>, vector<16x256xf32>,
    %c240_i32 = arith.constant 240 : i32
    %36 = tpu.dynamic_rotate %4 by %c240_i32 dim 1 : vector<16x256xf32>, i32 -> vector<16x256xf32>
    %c7 = arith.constant 7 : index
    %c0_25 = arith.constant 0 : index
    %c0_26 = arith.constant 0 : index
    %37 = vector.load %arg3[%c7, %c0_25, %c0_26] : memref<9x16x256xf32, #tpu.memory_space<vmem>>, vector<1x16x256xf32>
    %38 = vector.shape_cast %37 : vector<1x16x256xf32> to vector<16x256xf32>
    %39 = arith.mulf %36, %38 : vector<16x256xf32>
    %c112 = arith.constant 112 : index
    %c0_27 = arith.constant 0 : index
    %40 = vector.load %arg6[%c112, %c0_27] : memref<145x256xf32, #tpu.memory_space<vmem>>, vector<16x256xf32>
    tpu.vector_store %arg6[%c112, %c0_27], %39 {strides = array<i32>} : memref<145x256xf32, #tpu.memory_space<vmem>>, vector<16x256xf32>,
    %c239_i32 = arith.constant 239 : i32
    %41 = tpu.dynamic_rotate %4 by %c239_i32 dim 1 : vector<16x256xf32>, i32 -> vector<16x256xf32>
    %c8 = arith.constant 8 : index
    %c0_28 = arith.constant 0 : index
    %c0_29 = arith.constant 0 : index
    %42 = vector.load %arg3[%c8, %c0_28, %c0_29] : memref<9x16x256xf32, #tpu.memory_space<vmem>>, vector<1x16x256xf32>
    %43 = vector.shape_cast %42 : vector<1x16x256xf32> to vector<16x256xf32>
    %44 = arith.mulf %41, %43 : vector<16x256xf32>
    %c128 = arith.constant 128 : index
    %c0_30 = arith.constant 0 : index
    %45 = vector.load %arg6[%c128, %c0_30] : memref<145x256xf32, #tpu.memory_space<vmem>>, vector<16x256xf32>
    tpu.vector_store %arg6[%c128, %c0_30], %44 {strides = array<i32>} : memref<145x256xf32, #tpu.memory_space<vmem>>, vector<16x256xf32>,
    %c0_31 = arith.constant 0 : index
    %c0_32 = arith.constant 0 : index
    %46 = vector.load %arg4[%c0_31, %c0_32] : memref<34x145xf32, #tpu.memory_space<vmem>>, vector<32x145xf32>
    %c0_33 = arith.constant 0 : index
    %c0_34 = arith.constant 0 : index
    %47 = vector.load %arg6[%c0_33, %c0_34] : memref<145x256xf32, #tpu.memory_space<vmem>>, vector<145x256xf32>
    %cst_35 = arith.constant dense<0.000000e+00> : vector<32x256xf32>
    %48 = tpu.matmul %46, %47, %cst_35 {dimension_numbers = #tpu.dot_dimension_numbers<[1], [0], [0], [1], [0, 0, 1, 1], [], []>} : vector<32x145xf32>, vector<145x256xf32>, vector<32x256xf32> -> vector<32x256xf32>
    %cst_36 = arith.constant 0.000000e+00 : f32
    %49 = vector.broadcast %cst_36 : f32 to vector<32x256xf32>
    %50 = arith.maximumf %48, %49 : vector<32x256xf32>
    %51 = vector.extract_strided_slice %50 {offsets = [0, 0], sizes = [16, 256], strides = [1, 1]} : vector<32x256xf32> to vector<16x256xf32>
    %52 = vector.extract_strided_slice %50 {offsets = [16, 0], sizes = [16, 256], strides = [1, 1]} : vector<32x256xf32> to vector<16x256xf32>
    %53 = arith.subf %51, %52 : vector<16x256xf32>
    %54 = math.absf %53 : vector<16x256xf32>
    %c17_i32_37 = arith.constant 17 : i32
    %55 = tpu.dynamic_rotate %54 by %c17_i32_37 dim 1 : vector<16x256xf32>, i32 -> vector<16x256xf32>
    %c0_38 = arith.constant 0 : index
    %c0_39 = arith.constant 0 : index
    %c0_40 = arith.constant 0 : index
    %56 = vector.load %arg3[%c0_38, %c0_39, %c0_40] : memref<9x16x256xf32, #tpu.memory_space<vmem>>, vector<1x16x256xf32>
    %57 = vector.shape_cast %56 : vector<1x16x256xf32> to vector<16x256xf32>
    %58 = arith.mulf %55, %57 : vector<16x256xf32>
    %c0_41 = arith.constant 0 : index
    %c0_42 = arith.constant 0 : index
    %59 = vector.load %arg6[%c0_41, %c0_42] : memref<145x256xf32, #tpu.memory_space<vmem>>, vector<16x256xf32>
    tpu.vector_store %arg6[%c0_41, %c0_42], %58 {strides = array<i32>} : memref<145x256xf32, #tpu.memory_space<vmem>>, vector<16x256xf32>,
    %c16_i32_43 = arith.constant 16 : i32
    %60 = tpu.dynamic_rotate %54 by %c16_i32_43 dim 1 : vector<16x256xf32>, i32 -> vector<16x256xf32>
    %c1_44 = arith.constant 1 : index
    %c0_45 = arith.constant 0 : index
    %c0_46 = arith.constant 0 : index
    %61 = vector.load %arg3[%c1_44, %c0_45, %c0_46] : memref<9x16x256xf32, #tpu.memory_space<vmem>>, vector<1x16x256xf32>
    %62 = vector.shape_cast %61 : vector<1x16x256xf32> to vector<16x256xf32>
    %63 = arith.mulf %60, %62 : vector<16x256xf32>
    %c16_47 = arith.constant 16 : index
    %c0_48 = arith.constant 0 : index
    %64 = vector.load %arg6[%c16_47, %c0_48] : memref<145x256xf32, #tpu.memory_space<vmem>>, vector<16x256xf32>
    tpu.vector_store %arg6[%c16_47, %c0_48], %63 {strides = array<i32>} : memref<145x256xf32, #tpu.memory_space<vmem>>, vector<16x256xf32>,
    %c15_i32_49 = arith.constant 15 : i32
    %65 = tpu.dynamic_rotate %54 by %c15_i32_49 dim 1 : vector<16x256xf32>, i32 -> vector<16x256xf32>
    %c2_50 = arith.constant 2 : index
    %c0_51 = arith.constant 0 : index
    %c0_52 = arith.constant 0 : index
    %66 = vector.load %arg3[%c2_50, %c0_51, %c0_52] : memref<9x16x256xf32, #tpu.memory_space<vmem>>, vector<1x16x256xf32>
    %67 = vector.shape_cast %66 : vector<1x16x256xf32> to vector<16x256xf32>
    %68 = arith.mulf %65, %67 : vector<16x256xf32>
    %c32_53 = arith.constant 32 : index
    %c0_54 = arith.constant 0 : index
    %69 = vector.load %arg6[%c32_53, %c0_54] : memref<145x256xf32, #tpu.memory_space<vmem>>, vector<16x256xf32>
    tpu.vector_store %arg6[%c32_53, %c0_54], %68 {strides = array<i32>} : memref<145x256xf32, #tpu.memory_space<vmem>>, vector<16x256xf32>,
    %c1_i32_55 = arith.constant 1 : i32
    %70 = tpu.dynamic_rotate %54 by %c1_i32_55 dim 1 : vector<16x256xf32>, i32 -> vector<16x256xf32>
    %c3_56 = arith.constant 3 : index
    %c0_57 = arith.constant 0 : index
    %c0_58 = arith.constant 0 : index
    %71 = vector.load %arg3[%c3_56, %c0_57, %c0_58] : memref<9x16x256xf32, #tpu.memory_space<vmem>>, vector<1x16x256xf32>
    %72 = vector.shape_cast %71 : vector<1x16x256xf32> to vector<16x256xf32>
    %73 = arith.mulf %70, %72 : vector<16x256xf32>
    %c48_59 = arith.constant 48 : index
    %c0_60 = arith.constant 0 : index
    %74 = vector.load %arg6[%c48_59, %c0_60] : memref<145x256xf32, #tpu.memory_space<vmem>>, vector<16x256xf32>
    tpu.vector_store %arg6[%c48_59, %c0_60], %73 {strides = array<i32>} : memref<145x256xf32, #tpu.memory_space<vmem>>, vector<16x256xf32>,
    %c64_61 = arith.constant 64 : index
    %c0_62 = arith.constant 0 : index
    %75 = vector.load %arg6[%c64_61, %c0_62] : memref<145x256xf32, #tpu.memory_space<vmem>>, vector<16x256xf32>
    tpu.vector_store %arg6[%c64_61, %c0_62], %54 {strides = array<i32>} : memref<145x256xf32, #tpu.memory_space<vmem>>, vector<16x256xf32>,
    %c255_i32_63 = arith.constant 255 : i32
    %76 = tpu.dynamic_rotate %54 by %c255_i32_63 dim 1 : vector<16x256xf32>, i32 -> vector<16x256xf32>
    %c5_64 = arith.constant 5 : index
    %c0_65 = arith.constant 0 : index
    %c0_66 = arith.constant 0 : index
    %77 = vector.load %arg3[%c5_64, %c0_65, %c0_66] : memref<9x16x256xf32, #tpu.memory_space<vmem>>, vector<1x16x256xf32>
    %78 = vector.shape_cast %77 : vector<1x16x256xf32> to vector<16x256xf32>
    %79 = arith.mulf %76, %78 : vector<16x256xf32>
    %c80_67 = arith.constant 80 : index
    %c0_68 = arith.constant 0 : index
    %80 = vector.load %arg6[%c80_67, %c0_68] : memref<145x256xf32, #tpu.memory_space<vmem>>, vector<16x256xf32>
    tpu.vector_store %arg6[%c80_67, %c0_68], %79 {strides = array<i32>} : memref<145x256xf32, #tpu.memory_space<vmem>>, vector<16x256xf32>,
    %c241_i32_69 = arith.constant 241 : i32
    %81 = tpu.dynamic_rotate %54 by %c241_i32_69 dim 1 : vector<16x256xf32>, i32 -> vector<16x256xf32>
    %c6_70 = arith.constant 6 : index
    %c0_71 = arith.constant 0 : index
    %c0_72 = arith.constant 0 : index
    %82 = vector.load %arg3[%c6_70, %c0_71, %c0_72] : memref<9x16x256xf32, #tpu.memory_space<vmem>>, vector<1x16x256xf32>
    %83 = vector.shape_cast %82 : vector<1x16x256xf32> to vector<16x256xf32>
    %84 = arith.mulf %81, %83 : vector<16x256xf32>
    %c96_73 = arith.constant 96 : index
    %c0_74 = arith.constant 0 : index
    %85 = vector.load %arg6[%c96_73, %c0_74] : memref<145x256xf32, #tpu.memory_space<vmem>>, vector<16x256xf32>
    tpu.vector_store %arg6[%c96_73, %c0_74], %84 {strides = array<i32>} : memref<145x256xf32, #tpu.memory_space<vmem>>, vector<16x256xf32>,
    %c240_i32_75 = arith.constant 240 : i32
    %86 = tpu.dynamic_rotate %54 by %c240_i32_75 dim 1 : vector<16x256xf32>, i32 -> vector<16x256xf32>
    %c7_76 = arith.constant 7 : index
    %c0_77 = arith.constant 0 : index
    %c0_78 = arith.constant 0 : index
    %87 = vector.load %arg3[%c7_76, %c0_77, %c0_78] : memref<9x16x256xf32, #tpu.memory_space<vmem>>, vector<1x16x256xf32>
    %88 = vector.shape_cast %87 : vector<1x16x256xf32> to vector<16x256xf32>
    %89 = arith.mulf %86, %88 : vector<16x256xf32>
    %c112_79 = arith.constant 112 : index
    %c0_80 = arith.constant 0 : index
    %90 = vector.load %arg6[%c112_79, %c0_80] : memref<145x256xf32, #tpu.memory_space<vmem>>, vector<16x256xf32>
    tpu.vector_store %arg6[%c112_79, %c0_80], %89 {strides = array<i32>} : memref<145x256xf32, #tpu.memory_space<vmem>>, vector<16x256xf32>,
    %c239_i32_81 = arith.constant 239 : i32
    %91 = tpu.dynamic_rotate %54 by %c239_i32_81 dim 1 : vector<16x256xf32>, i32 -> vector<16x256xf32>
    %c8_82 = arith.constant 8 : index
    %c0_83 = arith.constant 0 : index
    %c0_84 = arith.constant 0 : index
    %92 = vector.load %arg3[%c8_82, %c0_83, %c0_84] : memref<9x16x256xf32, #tpu.memory_space<vmem>>, vector<1x16x256xf32>
    %93 = vector.shape_cast %92 : vector<1x16x256xf32> to vector<16x256xf32>
    %94 = arith.mulf %91, %93 : vector<16x256xf32>
    %c128_85 = arith.constant 128 : index
    %c0_86 = arith.constant 0 : index
    %95 = vector.load %arg6[%c128_85, %c0_86] : memref<145x256xf32, #tpu.memory_space<vmem>>, vector<16x256xf32>
    tpu.vector_store %arg6[%c128_85, %c0_86], %94 {strides = array<i32>} : memref<145x256xf32, #tpu.memory_space<vmem>>, vector<16x256xf32>,
    %c32_87 = arith.constant 32 : index
    %c0_88 = arith.constant 0 : index
    %96 = vector.load %arg4[%c32_87, %c0_88] : memref<34x145xf32, #tpu.memory_space<vmem>>, vector<2x145xf32>
    %c0_89 = arith.constant 0 : index
    %c0_90 = arith.constant 0 : index
    %97 = vector.load %arg6[%c0_89, %c0_90] : memref<145x256xf32, #tpu.memory_space<vmem>>, vector<145x256xf32>
    %cst_91 = arith.constant dense<0.000000e+00> : vector<2x256xf32>
    %98 = tpu.matmul %96, %97, %cst_91 {dimension_numbers = #tpu.dot_dimension_numbers<[1], [0], [0], [1], [0, 0, 1, 1], [], []>} : vector<2x145xf32>, vector<145x256xf32>, vector<2x256xf32> -> vector<2x256xf32>
    %cst_92 = arith.constant 5.000000e-01 : f32
    %99 = vector.broadcast %cst_92 : f32 to vector<2x256xf32>
    %100 = arith.mulf %99, %98 : vector<2x256xf32>
    %101 = math.tanh %100 : vector<2x256xf32>
    %cst_93 = arith.constant 5.000000e-01 : f32
    %102 = vector.broadcast %cst_93 : f32 to vector<2x256xf32>
    %103 = arith.mulf %102, %101 : vector<2x256xf32>
    %cst_94 = arith.constant 5.000000e-01 : f32
    %104 = vector.broadcast %cst_94 : f32 to vector<2x256xf32>
    %105 = arith.addf %104, %103 : vector<2x256xf32>
    %c0_95 = arith.constant 0 : index
    %c0_96 = arith.constant 0 : index
    %106 = vector.load %arg5[%c0_95, %c0_96] : memref<2x256xf32, #tpu.memory_space<vmem>>, vector<2x256xf32>
    tpu.vector_store %arg5[%c0_95, %c0_96], %105 {strides = array<i32>} : memref<2x256xf32, #tpu.memory_space<vmem>>, vector<2x256xf32>,
    return
  }
  func.func @transform_0(%arg0: i32) -> (i32, i32) {
    %c0_i32 = arith.constant 0 : i32
    %c0_i32_0 = arith.constant 0 : i32
    %c0_i32_1 = arith.constant 0 : i32
    return %c0_i32, %c0_i32_0 : i32, i32
  }
  func.func @transform_1(%arg0: i32) -> (i32, i32) {
    %c0_i32 = arith.constant 0 : i32
    %c0_i32_0 = arith.constant 0 : i32
    %c0_i32_1 = arith.constant 0 : i32
    return %c0_i32, %c0_i32_0 : i32, i32
  }
  func.func @transform_2(%arg0: i32) -> (i32, i32, i32) {
    %c0_i32 = arith.constant 0 : i32
    %c0_i32_0 = arith.constant 0 : i32
    %c0_i32_1 = arith.constant 0 : i32
    %c0_i32_2 = arith.constant 0 : i32
    return %c0_i32, %c0_i32_0, %c0_i32_1 : i32, i32, i32
  }
  func.func @transform_3(%arg0: i32) -> (i32, i32) {
    %c0_i32 = arith.constant 0 : i32
    %c0_i32_0 = arith.constant 0 : i32
    %c0_i32_1 = arith.constant 0 : i32
    return %c0_i32, %c0_i32_0 : i32, i32
  }
  func.func @transform_4(%arg0: i32) -> (i32, i32) {
    %c0_i32 = arith.constant 0 : i32
    %c0_i32_0 = arith.constant 0 : i32
    %c0_i32_1 = arith.constant 0 : i32
    return %c0_i32, %c0_i32_0 : i32, i32
  }
}

</mosaic_0001>

<bundles_post_ra>
// kernel: change_detector.1
= control target key start
LH: loop header
LB: loop body
LE: loop exit
PB: predicated region body
PF: predicated region fallthrough
CT: control target
= control target key end

     0   :  { %9 = vsyncpa [#allocation4], 0  ;;  %s944_s15 = smov [#allocation3]   ;;  %s1567_s0 = inlined_call_operand.vmem [shape: f32[8,256], index: 0, kind: input, shape index: {}]   ;;  %s1568_s1 = inlined_call_operand.vmem [shape: f32[8,256], index: 1, kind: input, shape index: {}]   ;;  %s1569_s2 = inlined_call_operand.vmem [shape: f32[9,16,256], index: 2, kind: input, shape index: {}]   ;;  %s1570_s3 = inlined_call_operand.hbm [shape: f32[34,145], index: 3, kind: input, shape index: {}]   ;;  %s1571_s4 = inlined_call_operand.vmem [shape: f32[2,256], index: 4, kind: output, shape index: {}]  }
   0x1   :  { %s21_s16 = sshll.u32 %s944_s15, 4  ;;  %s920_s19 = scalar_lea.hbm %s1570_s3, 1280  ;;  %s22_s16 = int_to_ptr.vmem [resolvable:$true] %s21_s16 }
   0x2   :  { %p921_p0 = scmp.ne.s32.totalorder %s1570_s3, %s920_s19  ;;  %p924_p1 = scmp.lt.u32.totalorder %s920_s19, %s1570_s3 }
   0x4   :  { %p926_p2 = pnand %p924_p1, %p921_p0 }
   0x6   :  { %929 = shalt.err (!%p926_p2)
}
   0x7   :  { %s930_s24 = scalar_lea.vmem %s22_s16, 1280  ;;  %p935_p4 = scmp.lt.s32.totalorder %s22_s16, %s22_s16 }
   0x8   :  { %p931_p3 = scmp.ne.s32.totalorder %s22_s16, %s930_s24  ;;  %p936_p5 = scmp.lt.s32.totalorder %s930_s24, %s930_s24 }
   0xa   :  { %p937_p6 = por %p936_p5, %p935_p4 }
   0xc   :  { %p938_p7 = pnand %p937_p6, %p931_p3 }
   0xe   :  { %941 = shalt.err (!%p938_p7)
}
   0xf   :  { %s945_s25 = smov 256   ;;  %s946_s26 = smov 16  }
  0x10   :  { %27 = dma.hbm_to_vmem [thread:$0]  %s1570_s3, 1280, %s22_s16, [#allocation4], %s945_s25, %s945_s25, %s946_s26  }
  0x11   :  { %942 = dma.done.wait [#allocation4], 1280  }
  0x12   :  { %943 = vsyncadd [#allocation4], 4294966016  ;;  %v996_v0 = vld [vmem:[%s1567_s0 + $0x8] sm:$0xff]  ;;  %v1001_v1 = vld [vmem:[%s1567_s0] sm:$0xff]  ;;  %s947_s7 = smov 17   ;;  %s948_s0 = smov 15   ;;  %v31_v6 = vlaneseq }
  0x13   :  { %46 = vrot.lane.b32.xlu1 %v996_v0, %s947_s7  ;;  %42 = vrot.lane.b32.xlu0 %v1001_v1, %s947_s7  ;;  %v1010_v2 = vld [vmem:[%s1568_s1 + $0x8] sm:$0xff]  ;;  %v1015_v3 = vld [vmem:[%s1568_s1] sm:$0xff]  ;;  %s949_s1 = smov 1   ;;  %s950_s11 = smov 127   ;;  %v953_v7 = vmov 1.0   ;;  %v256_v8 = vld [vmem:[#allocation3 + $0x8] sm:$0xff] }
  0x14   :  { %v849_v4 = vpack.c.bf16 %v1010_v2, %v996_v0  ;;  %v851_v5 = vpack.c.bf16 %v1015_v3, %v1001_v1  ;;  %s951_s12 = smov 113   ;;  %vm33_vm0 = vcmp.lt.s32.totalorder %v31_v6, 256  ;;  %s952_s13 = smov 112   ;;  %vm301_vm1 = vcmask 138240   ;;  %v1088_v12 = vld [vmem:[%s1569_s2] sm:$0xff]  ;;  %v1093_v13 = vld [vmem:[%s1569_s2 + $0x8] sm:$0xff] }
  0x15   :  { %36 = vst.msk [vmem:[#allocation2 + $0x120] ss:$8 sm:$0x3] %vm33_vm0, %v953_v7  ;;  %s954_s14 = smov 111   ;;  %797 = vmatprep.mubr.msk.f32.mxu0 %vm301_vm1, %v256_v8  ;;  %v1082_v9 = vand.u32 127, %v31_v6  ;;  %v1102_v16 = vld [vmem:[%s1569_s2 + $0x10] sm:$0xff] }
  0x16   :  { %v1107_v17 = vld [vmem:[%s1569_s2 + $0x18] sm:$0xff]  ;;  %v1121_v30 = vld [vmem:[%s1569_s2 + $0x30] sm:$0xff]  ;;  %v1131_v32 = vld [vmem:[%s1569_s2 + $0x20] sm:$0xff]  ;;  %vm314_vm10 = vcmask 1040384  }
  0x17   :  { %48 = vrot.lane.b32.xlu1 %v1010_v2, %s947_s7  ;;  %44 = vrot.lane.b32.xlu0 %v1015_v3, %s947_s7  ;;  %vm52_vm2 = vcmp.lt.s32.totalorder %v1082_v9, 17  ;;  %vm77_vm3 = vcmp.lt.s32.totalorder %v1082_v9, 16  ;;  %v1126_v31 = vld [vmem:[%s1569_s2 + $0x38] sm:$0xff]  ;;  %v1136_v33 = vld [vmem:[%s1569_s2 + $0x28] sm:$0xff]  ;;  %vm103_vm4 = vcmp.lt.s32.totalorder %v1082_v9, 15  ;;  %vm129_vm5 = vcmp.lt.s32.totalorder %v1082_v9, 1 }
  0x18   :  { %v1154_v48 = vld [vmem:[%s1569_s2 + $0x50] sm:$0xff]  ;;  %v1159_v49 = vld [vmem:[%s1569_s2 + $0x58] sm:$0xff]  ;;  %v1164_v50 = vld [vmem:[%s1569_s2 + $0x40] sm:$0xff]  ;;  %vm159_vm6 = vcmp.lt.s32.totalorder %v1082_v9, 127  ;;  %vm185_vm7 = vcmp.lt.s32.totalorder %v1082_v9, 113  ;;  %vm211_vm8 = vcmp.lt.s32.totalorder %v1082_v9, 112 }
  0x19   :  { %v1169_v51 = vld [vmem:[%s1569_s2 + $0x48] sm:$0xff]  ;;  %v1187_v8 = vld [vmem:[%s1569_s2 + $0x70] sm:$0xff]  ;;  %vm237_vm9 = vcmp.lt.s32.totalorder %v1082_v9, 111 }
  0x1b   :  { %71 = vrot.lane.b32.xlu1 %v1015_v3, %s946_s26  ;;  %69 = vrot.lane.b32.xlu0 %v1001_v1, %s946_s26 }
  0x1f   :  { %75 = vrot.lane.b32.xlu1 %v1010_v2, %s946_s26  ;;  %73 = vrot.lane.b32.xlu0 %v996_v0, %s946_s26 }
  0x23   :  { %97 = vrot.lane.b32.xlu1 %v1015_v3, %s948_s0  ;;  %95 = vrot.lane.b32.xlu0 %v1001_v1, %s948_s0 }
  0x27   :  { %101 = vrot.lane.b32.xlu1 %v1010_v2, %s948_s0  ;;  %99 = vrot.lane.b32.xlu0 %v996_v0, %s948_s0 }
  0x2b   :  { %123 = vrot.lane.b32.xlu1 %v1015_v3, %s949_s1  ;;  %121 = vrot.lane.b32.xlu0 %v1001_v1, %s949_s1 }
  0x2f   :  { %127 = vrot.lane.b32.xlu1 %v1010_v2, %s949_s1  ;;  %125 = vrot.lane.b32.xlu0 %v996_v0, %s949_s1 }
  0x33   :  { %153 = vrot.lane.b32.xlu1 %v1015_v3, %s950_s11  ;;  %151 = vrot.lane.b32.xlu0 %v1001_v1, %s950_s11 }
  0x37   :  { %157 = vrot.lane.b32.xlu1 %v1010_v2, %s950_s11  ;;  %155 = vrot.lane.b32.xlu0 %v996_v0, %s950_s11 }
  0x3b   :  { %179 = vrot.lane.b32.xlu1 %v1015_v3, %s951_s12  ;;  %177 = vrot.lane.b32.xlu0 %v1001_v1, %s951_s12 }
  0x3f   :  { %183 = vrot.lane.b32.xlu1 %v1010_v2, %s951_s12  ;;  %181 = vrot.lane.b32.xlu0 %v996_v0, %s951_s12 }
  0x43   :  { %205 = vrot.lane.b32.xlu1 %v1015_v3, %s952_s13  ;;  %203 = vrot.lane.b32.xlu0 %v1001_v1, %s952_s13 }
  0x47   :  { %209 = vrot.lane.b32.xlu1 %v1010_v2, %s952_s13  ;;  %207 = vrot.lane.b32.xlu0 %v996_v0, %s952_s13 }
  0x4b   :  { %231 = vrot.lane.b32.xlu1 %v1015_v3, %s954_s14  ;;  %229 = vrot.lane.b32.xlu0 %v1001_v1, %s954_s14  ;;  %v1269_v1 = vld [vmem:[%s1569_s2 + $0xc0] sm:$0xff]  ;;  %v1274_v3 = vld [vmem:[%s1569_s2 + $0xc8] sm:$0xff] }
  0x4f   :  { %235 = vrot.lane.b32.xlu1 %v1010_v2, %s954_s14  ;;  %233 = vrot.lane.b32.xlu0 %v996_v0, %s954_s14 }
  0x85   :  { %v47_v10 = vpop.permute.xlu1 %46  ;;  %v43_v11 = vpop.permute.xlu0 %42 }
  0x86   :  { %v53_v14 = vsel %vm52_vm2, %v43_v11, %v47_v10  ;;  %v55_v15 = vsel %vm52_vm2, %v47_v10, %v43_v11  ;;  %v1192_v10 = vld [vmem:[%s1569_s2 + $0x78] sm:$0xff]  ;;  %v1197_v11 = vld [vmem:[%s1569_s2 + $0x60] sm:$0xff] }
  0x87   :  { %v61_v22 = vmul.f32 %v1088_v12, %v55_v15  ;;  %v62_v23 = vmul.f32 %v1093_v13, %v53_v14  ;;  %v1202_v14 = vld [vmem:[%s1569_s2 + $0x68] sm:$0xff] }
  0x89   :  { %v49_v18 = vpop.permute.xlu1 %48  ;;  %v45_v19 = vpop.permute.xlu0 %44 }
  0x8a   :  { %v54_v20 = vsel %vm52_vm2, %v45_v19, %v49_v18  ;;  %v56_v21 = vsel %vm52_vm2, %v49_v18, %v45_v19 }
  0x8b   :  { %v63_v24 = vmul.f32 %v1102_v16, %v56_v21  ;;  %v64_v25 = vmul.f32 %v1107_v17, %v54_v20 }
  0x8d   :  { %v72_v26 = vpop.permute.xlu1 %71  ;;  %v70_v27 = vpop.permute.xlu0 %69  ;;  %v833_v28 = vpack.c.bf16 %v64_v25, %v62_v23  ;;  %v835_v29 = vpack.c.bf16 %v63_v24, %v61_v22 }
  0x8f   :  { %834 = vmatprep.subr.bf16.mxu0 %v833_v28 }
  0x90   :  { %836 = vmatpush1.bf16.msra.mxu0 %v835_v29 }
  0x91   :  { %v76_v34 = vpop.permute.xlu1 %75  ;;  %v74_v35 = vpop.permute.xlu0 %73 }
  0x92   :  { %v79_v36 = vsel %vm77_vm3, %v72_v26, %v76_v34  ;;  %v81_v37 = vsel %vm77_vm3, %v76_v34, %v72_v26  ;;  %v78_v38 = vsel %vm77_vm3, %v70_v27, %v74_v35  ;;  %v80_v39 = vsel %vm77_vm3, %v74_v35, %v70_v27  ;;  %v1220_v35 = vld [vmem:[%s1569_s2 + $0xb0] sm:$0xff] }
  0x93   :  { %v89_v40 = vmul.f32 %v1121_v30, %v81_v37  ;;  %v90_v41 = vmul.f32 %v1126_v31, %v79_v36  ;;  %v87_v42 = vmul.f32 %v1131_v32, %v80_v39  ;;  %v88_v43 = vmul.f32 %v1136_v33, %v78_v38  ;;  %v1225_v36 = vld [vmem:[%s1569_s2 + $0xb8] sm:$0xff]  ;;  %v1230_v37 = vld [vmem:[%s1569_s2 + $0xa0] sm:$0xff]  ;;  %v1235_v38 = vld [vmem:[%s1569_s2 + $0xa8] sm:$0xff] }
  0x95   :  { %v98_v44 = vpop.permute.xlu1 %97  ;;  %v96_v45 = vpop.permute.xlu0 %95  ;;  %v837_v46 = vpack.c.bf16 %v90_v41, %v88_v43  ;;  %v839_v47 = vpack.c.bf16 %v89_v40, %v87_v42 }
  0x97   :  { %838 = vmatprep.subr.bf16.mxu0 %v837_v46 }
  0x98   :  { %840 = vmatpush1.bf16.msra.mxu0 %v839_v47 }
  0x99   :  { %v102_v52 = vpop.permute.xlu1 %101  ;;  %v100_v53 = vpop.permute.xlu0 %99 }
  0x9a   :  { %v105_v54 = vsel %vm103_vm4, %v98_v44, %v102_v52  ;;  %v107_v55 = vsel %vm103_vm4, %v102_v52, %v98_v44  ;;  %v104_v56 = vsel %vm103_vm4, %v96_v45, %v100_v53  ;;  %v106_v57 = vsel %vm103_vm4, %v100_v53, %v96_v45 }
  0x9b   :  { %v115_v58 = vmul.f32 %v1154_v48, %v107_v55  ;;  %v116_v59 = vmul.f32 %v1159_v49, %v105_v54  ;;  %v113_v60 = vmul.f32 %v1164_v50, %v106_v57  ;;  %v114_v61 = vmul.f32 %v1169_v51, %v104_v56  ;;  %v1259_v54 = vld [vmem:[%s1569_s2 + $0xd0] sm:$0xff]  ;;  %v1264_v55 = vld [vmem:[%s1569_s2 + $0xd8] sm:$0xff] }
  0x9d   :  { %v124_v62 = vpop.permute.xlu1 %123  ;;  %v122_v63 = vpop.permute.xlu0 %121  ;;  %v841_v6 = vpack.c.bf16 %v116_v59, %v114_v61  ;;  %v843_v7 = vpack.c.bf16 %v115_v58, %v113_v60 }
  0x9f   :  { %842 = vmatprep.subr.bf16.mxu0 %v841_v6 }
  0xa0   :  { %844 = vmatpush1.bf16.msra.mxu0 %v843_v7 }
  0xa1   :  { %v128_v15 = vpop.permute.xlu1 %127  ;;  %v126_v18 = vpop.permute.xlu0 %125 }
  0xa2   :  { %v131_v19 = vsel %vm129_vm5, %v124_v62, %v128_v15  ;;  %v133_v20 = vsel %vm129_vm5, %v128_v15, %v124_v62  ;;  %v130_v21 = vsel %vm129_vm5, %v122_v63, %v126_v18  ;;  %v132_v22 = vsel %vm129_vm5, %v126_v18, %v122_v63 }
  0xa3   :  { %v141_v23 = vmul.f32 %v1187_v8, %v133_v20  ;;  %v142_v24 = vmul.f32 %v1192_v10, %v131_v19  ;;  %v139_v25 = vmul.f32 %v1197_v11, %v132_v22  ;;  %v140_v26 = vmul.f32 %v1202_v14, %v130_v21  ;;  %v1292_v20 = vld [vmem:[%s1569_s2 + $0xf0] sm:$0xff]  ;;  %v1297_v21 = vld [vmem:[%s1569_s2 + $0xf8] sm:$0xff]  ;;  %v1302_v22 = vld [vmem:[%s1569_s2 + $0xe0] sm:$0xff] }
  0xa5   :  { %v154_v27 = vpop.permute.xlu1 %153  ;;  %v152_v28 = vpop.permute.xlu0 %151  ;;  %v845_v29 = vpack.c.bf16 %v142_v24, %v140_v26  ;;  %v847_v34 = vpack.c.bf16 %v141_v23, %v139_v25  ;;  %v1307_v23 = vld [vmem:[%s1569_s2 + $0xe8] sm:$0xff] }
  0xa7   :  { %846 = vmatprep.subr.bf16.mxu0 %v845_v29 }
  0xa8   :  { %848 = vmatpush1.bf16.msra.mxu0 %v847_v34 }
  0xa9   :  { %v158_v39 = vpop.permute.xlu1 %157  ;;  %v156_v40 = vpop.permute.xlu0 %155  ;;  %850 = vmatprep.subr.bf16.mxu0 %v849_v4 }
  0xaa   :  { %v161_v41 = vsel %vm159_vm6, %v154_v27, %v158_v39  ;;  %v163_v42 = vsel %vm159_vm6, %v158_v39, %v154_v27  ;;  %v160_v43 = vsel %vm159_vm6, %v152_v28, %v156_v40  ;;  %v162_v44 = vsel %vm159_vm6, %v156_v40, %v152_v28 }
  0xab   :  { %v171_v45 = vmul.f32 %v1220_v35, %v161_v41  ;;  %v172_v46 = vmul.f32 %v1225_v36, %v163_v42  ;;  %v169_v47 = vmul.f32 %v1230_v37, %v160_v43  ;;  %v170_v0 = vmul.f32 %v1235_v38, %v162_v44 }
  0xac   :  { %852 = vmatpush1.bf16.msra.mxu0 %v851_v5 }
  0xad   :  { %v180_v2 = vpop.permute.xlu1 %179  ;;  %v178_v4 = vpop.permute.xlu0 %177  ;;  %v853_v52 = vpack.c.bf16 %v172_v46, %v170_v0  ;;  %v855_v53 = vpack.c.bf16 %v171_v45, %v169_v47  ;;  %v1325_v46 = vld [vmem:[%s1569_s2 + $0x110] sm:$0xff]  ;;  %v1330_v47 = vld [vmem:[%s1569_s2 + $0x118] sm:$0xff]  ;;  %v1335_v0 = vld [vmem:[%s1569_s2 + $0x100] sm:$0xff] }
  0xaf   :  { %854 = vmatprep.subr.bf16.mxu0 %v853_v52 }
  0xb0   :  { %856 = vmatpush1.bf16.msra.mxu0 %v855_v53 }
  0xb1   :  { %v184_v5 = vpop.permute.xlu1 %183  ;;  %v182_v56 = vpop.permute.xlu0 %181 }
  0xb2   :  { %v187_v57 = vsel %vm185_vm7, %v180_v2, %v184_v5  ;;  %v189_v58 = vsel %vm185_vm7, %v184_v5, %v180_v2  ;;  %v186_v59 = vsel %vm185_vm7, %v178_v4, %v182_v56  ;;  %v188_v60 = vsel %vm185_vm7, %v182_v56, %v178_v4  ;;  %v1340_v2 = vld [vmem:[%s1569_s2 + $0x108] sm:$0xff] }
  0xb3   :  { %v197_v61 = vmul.f32 %v1259_v54, %v187_v57  ;;  %v198_v62 = vmul.f32 %v1264_v55, %v189_v58  ;;  %v195_v63 = vmul.f32 %v1269_v1, %v186_v59  ;;  %v196_v6 = vmul.f32 %v1274_v3, %v188_v60 }
  0xb5   :  { %v206_v7 = vpop.permute.xlu1 %205  ;;  %v204_v15 = vpop.permute.xlu0 %203  ;;  %v857_v18 = vpack.c.bf16 %v198_v62, %v196_v6  ;;  %v859_v19 = vpack.c.bf16 %v197_v61, %v195_v63  ;;  %v300_v6 = vld [vmem:[#allocation2 + $0x128] sm:$0x1] }
  0xb7   :  { %858 = vmatprep.subr.bf16.mxu0 %v857_v18  ;;  %v258_v18 = vld [vmem:[#allocation3 + $0x18] sm:$0xff] }
  0xb8   :  { %860 = vmatpush1.bf16.msra.mxu0 %v859_v19  ;;  %v257_v19 = vld [vmem:[#allocation3 + $0x10] sm:$0xff] }
  0xb9   :  { %v210_v24 = vpop.permute.xlu1 %209  ;;  %v208_v25 = vpop.permute.xlu0 %207 }
  0xba   :  { %v213_v26 = vsel %vm211_vm8, %v206_v7, %v210_v24  ;;  %v215_v27 = vsel %vm211_vm8, %v210_v24, %v206_v7  ;;  %v212_v28 = vsel %vm211_vm8, %v204_v15, %v208_v25  ;;  %v214_v29 = vsel %vm211_vm8, %v208_v25, %v204_v15  ;;  %v299_v7 = vld [vmem:[#allocation2 + $0x120] sm:$0x1]  ;;  %v255_v15 = vld [vmem:[#allocation3] sm:$0xff]  ;;  %v260_v24 = vld [vmem:[#allocation3 + $0x28] sm:$0xff] }
  0xbb   :  { %v223_v34 = vmul.f32 %v1292_v20, %v213_v26  ;;  %v224_v39 = vmul.f32 %v1297_v21, %v215_v27  ;;  %v221_v40 = vmul.f32 %v1302_v22, %v212_v28  ;;  %v222_v41 = vmul.f32 %v1307_v23, %v214_v29  ;;  %v259_v25 = vld [vmem:[#allocation3 + $0x20] sm:$0xff]  ;;  %v262_v26 = vld [vmem:[#allocation3 + $0x38] sm:$0xff]  ;;  %v261_v27 = vld [vmem:[#allocation3 + $0x30] sm:$0xff] }
  0xbd   :  { %v232_v42 = vpop.permute.xlu1 %231  ;;  %v230_v43 = vpop.permute.xlu0 %229  ;;  %v861_v44 = vpack.c.bf16 %v224_v39, %v222_v41  ;;  %v863_v45 = vpack.c.bf16 %v223_v34, %v221_v40 }
  0xbf   :  { %862 = vmatprep.subr.bf16.mxu0 %v861_v44 }
  0xc0   :  { %864 = vmatpush1.bf16.msra.mxu0 %v863_v45 }
  0xc1   :  { %v236_v4 = vpop.permute.xlu1 %235  ;;  %v234_v52 = vpop.permute.xlu0 %233 }
  0xc2   :  { %v239_v53 = vsel %vm237_vm9, %v232_v42, %v236_v4  ;;  %v241_v5 = vsel %vm237_vm9, %v236_v4, %v232_v42  ;;  %v238_v56 = vsel %vm237_vm9, %v230_v43, %v234_v52  ;;  %v240_v57 = vsel %vm237_vm9, %v234_v52, %v230_v43 }
  0xc3   :  { %v249_v58 = vmul.f32 %v1325_v46, %v239_v53  ;;  %v250_v59 = vmul.f32 %v1330_v47, %v241_v5  ;;  %v247_v60 = vmul.f32 %v1335_v0, %v238_v56  ;;  %v248_v61 = vmul.f32 %v1340_v2, %v240_v57 }
  0xc5   :  { %v865_v62 = vpack.c.bf16 %v250_v59, %v248_v61  ;;  %v867_v63 = vpack.c.bf16 %v249_v58, %v247_v60 }
  0xc7   :  { %866 = vmatprep.subr.bf16.mxu0 %v865_v62 }
  0xc8   :  { %868 = vmatpush1.bf16.msra.mxu0 %v867_v63 }
  0xc9   :  { %795 = vmatprep.subr.msk.mxu0 %vm314_vm10, %v300_v6 }
  0xcc   :  { %796 = vmatpush1.msk.msra.mxu0 %vm314_vm10, %v299_v7 }
  0xcd   :  { %386 = vmatmul.mubr.f32.vlgmr.msra.gmra.mrb[0].mxu0 %v255_v15 }
  0xce   :  { %798 = vmatprep.mubr.msk.f32.mxu0 %vm301_vm1, %v258_v18 }
  0xd1   :  { %392 = vmatmul.mubr.f32.gmra.mrb[2].mxu0 %v257_v19  ;;  %v623_v19 = vld [vmem:[#allocation3 + $0x48] sm:$0x3] }
  0xd2   :  { %799 = vmatprep.mubr.msk.f32.mxu0 %vm301_vm1, %v260_v24  ;;  %831 = vmatprep.mubr.msk.f32.mxu1 %vm301_vm1, %v623_v19 }
  0xd5   :  { %398 = vmatmul.mubr.f32.gmra.mrb[4].mxu0 %v259_v25 }
  0xd6   :  { %800 = vmatprep.mubr.msk.f32.mxu0 %vm301_vm1, %v262_v26 }
  0xd9   :  { %404 = vmatmul.mubr.f32.gmra.mrb[6].mxu0 %v261_v27 }
 0x1a0   :  { %v387_v28 = vpop.f32.mrb[0].mxu0 }
 0x1a1   :  { %v389_v29 = vpop.f32.mrb[1].mxu0  ;;  %v410_v41 = vmax.f32 %v387_v28, 0.0 }
 0x1a2   :  { %v411_v44 = vmax.f32 %v389_v29, 0.0 }
 0x1a4   :  { %v393_v34 = vpop.f32.mrb[2].mxu0 }
 0x1a5   :  { %v395_v39 = vpop.f32.mrb[3].mxu0  ;;  %v412_v5 = vmax.f32 %v393_v34, 0.0 }
 0x1a6   :  { %v413_v59 = vmax.f32 %v395_v39, 0.0 }
 0x1a8   :  { %v399_v40 = vpop.f32.mrb[4].mxu0 }
 0x1a9   :  { %v414_v42 = vmax.f32 %v399_v40, 0.0  ;;  %v401_v43 = vpop.f32.mrb[5].mxu0 }
 0x1aa   :  { %v415_v45 = vmax.f32 %v401_v43, 0.0 }
 0x1ab   :  { %v418_v4 = vsub.f32 %v410_v41, %v414_v42 }
 0x1ac   :  { %v419_v52 = vsub.f32 %v411_v44, %v415_v45  ;;  %v405_v53 = vpop.f32.mrb[6].mxu0 }
 0x1ad   :  { %v1359_v56 = vand.u32 2147483647, %v418_v4  ;;  %v416_v57 = vmax.f32 %v405_v53, 0.0  ;;  %v407_v58 = vpop.f32.mrb[7].mxu0 }
 0x1ae   :  { %v1361_v60 = vand.u32 2147483647, %v419_v52  ;;  %v417_v61 = vmax.f32 %v407_v58, 0.0 }
 0x1af   :  { %v420_v62 = vsub.f32 %v412_v5, %v416_v57  ;;  %426 = vrot.lane.b32.xlu0 %v1359_v56, %s947_s7 }
 0x1b0   :  { %v421_v63 = vsub.f32 %v413_v59, %v417_v61 }
 0x1b1   :  { %v1365_v6 = vand.u32 2147483647, %v420_v62 }
 0x1b2   :  { %v1367_v7 = vand.u32 2147483647, %v421_v63 }
 0x1b3   :  { %450 = vrot.lane.b32.xlu0 %v1359_v56, %s946_s26  ;;  %428 = vrot.lane.b32.xlu1 %v1365_v6, %s947_s7 }
 0x1b7   :  { %474 = vrot.lane.b32.xlu0 %v1359_v56, %s948_s0  ;;  %452 = vrot.lane.b32.xlu1 %v1365_v6, %s946_s26 }
 0x1bb   :  { %498 = vrot.lane.b32.xlu0 %v1359_v56, %s949_s1  ;;  %476 = vrot.lane.b32.xlu1 %v1365_v6, %s948_s0 }
 0x1bf   :  { %526 = vrot.lane.b32.xlu0 %v1359_v56, %s950_s11  ;;  %500 = vrot.lane.b32.xlu1 %v1365_v6, %s949_s1 }
 0x1c3   :  { %550 = vrot.lane.b32.xlu0 %v1359_v56, %s951_s12  ;;  %528 = vrot.lane.b32.xlu1 %v1365_v6, %s950_s11 }
 0x1c7   :  { %574 = vrot.lane.b32.xlu0 %v1359_v56, %s952_s13  ;;  %552 = vrot.lane.b32.xlu1 %v1365_v6, %s951_s12 }
 0x1cb   :  { %430 = vrot.lane.b32.xlu0 %v1361_v60, %s947_s7  ;;  %576 = vrot.lane.b32.xlu1 %v1365_v6, %s952_s13 }
 0x1cf   :  { %454 = vrot.lane.b32.xlu0 %v1361_v60, %s946_s26  ;;  %432 = vrot.lane.b32.xlu1 %v1367_v7, %s947_s7 }
 0x1d3   :  { %478 = vrot.lane.b32.xlu0 %v1361_v60, %s948_s0  ;;  %456 = vrot.lane.b32.xlu1 %v1367_v7, %s946_s26 }
 0x1d7   :  { %502 = vrot.lane.b32.xlu0 %v1361_v60, %s949_s1  ;;  %480 = vrot.lane.b32.xlu1 %v1367_v7, %s948_s0 }
 0x1db   :  { %598 = vrot.lane.b32.xlu0 %v1359_v56, %s954_s14  ;;  %504 = vrot.lane.b32.xlu1 %v1367_v7, %s949_s1 }
 0x1df   :  { %530 = vrot.lane.b32.xlu0 %v1361_v60, %s950_s11  ;;  %600 = vrot.lane.b32.xlu1 %v1365_v6, %s954_s14 }
 0x1e3   :  { %554 = vrot.lane.b32.xlu0 %v1361_v60, %s951_s12  ;;  %532 = vrot.lane.b32.xlu1 %v1367_v7, %s950_s11 }
 0x1e7   :  { %578 = vrot.lane.b32.xlu0 %v1361_v60, %s952_s13  ;;  %556 = vrot.lane.b32.xlu1 %v1367_v7, %s951_s12 }
 0x1eb   :  { %602 = vrot.lane.b32.xlu0 %v1361_v60, %s954_s14  ;;  %580 = vrot.lane.b32.xlu1 %v1367_v7, %s952_s13 }
 0x1ef   :  { %604 = vrot.lane.b32.xlu1 %v1367_v7, %s954_s14 }
 0x221   :  { %v427_v24 = vpop.permute.xlu0 %426 }
 0x225   :  { %v451_v25 = vpop.permute.xlu0 %450  ;;  %v429_v26 = vpop.permute.xlu1 %428 }
 0x229   :  { %v475_v27 = vpop.permute.xlu0 %474  ;;  %v453_v28 = vpop.permute.xlu1 %452 }
 0x22d   :  { %v499_v29 = vpop.permute.xlu0 %498  ;;  %v477_v34 = vpop.permute.xlu1 %476 }
 0x231   :  { %v1436_v39 = vpop.permute.xlu0 %526  ;;  %v501_v40 = vpop.permute.xlu1 %500 }
 0x235   :  { %v1438_v41 = vpop.permute.xlu0 %550  ;;  %v1440_v42 = vpop.permute.xlu1 %528 }
 0x239   :  { %v1442_v43 = vpop.permute.xlu0 %574  ;;  %v1444_v44 = vpop.permute.xlu1 %552 }
 0x23d   :  { %v431_v45 = vpop.permute.xlu0 %430  ;;  %v1446_v4 = vpop.permute.xlu1 %576 }
 0x23e   :  { %v434_v52 = vsel %vm52_vm2, %v427_v24, %v431_v45  ;;  %v436_v53 = vsel %vm52_vm2, %v431_v45, %v427_v24 }
 0x23f   :  { %v442_v5 = vmul.f32 %v436_v53, %v1088_v12  ;;  %v443_v57 = vmul.f32 %v434_v52, %v1093_v13 }
 0x241   :  { %v455_v58 = vpop.permute.xlu0 %454  ;;  %v433_v59 = vpop.permute.xlu1 %432 }
 0x242   :  { %v458_v61 = vsel %vm77_vm3, %v451_v25, %v455_v58  ;;  %v460_v62 = vsel %vm77_vm3, %v455_v58, %v451_v25  ;;  %v435_v63 = vsel %vm52_vm2, %v429_v26, %v433_v59  ;;  %v437_v19 = vsel %vm52_vm2, %v433_v59, %v429_v26 }
 0x243   :  { %v466_v24 = vmul.f32 %v1131_v32, %v460_v62  ;;  %v467_v12 = vmul.f32 %v1136_v33, %v458_v61  ;;  %v444_v13 = vmul.f32 %v437_v19, %v1102_v16  ;;  %v445_v45 = vmul.f32 %v435_v63, %v1107_v17 }
 0x245   :  { %v479_v52 = vpop.permute.xlu0 %478  ;;  %v457_v53 = vpop.permute.xlu1 %456  ;;  %v869_v15 = vpack.c.bf16 %v445_v45, %v443_v57  ;;  %v871_v18 = vpack.c.bf16 %v444_v13, %v442_v5 }
 0x246   :  { %v482_v25 = vsel %vm103_vm4, %v475_v27, %v479_v52  ;;  %v484_v58 = vsel %vm103_vm4, %v479_v52, %v475_v27  ;;  %v459_v26 = vsel %vm77_vm3, %v453_v28, %v457_v53  ;;  %v461_v32 = vsel %vm77_vm3, %v457_v53, %v453_v28 }
 0x247   :  { %v490_v16 = vmul.f32 %v1164_v50, %v484_v58  ;;  %v491_v17 = vmul.f32 %v1169_v51, %v482_v25  ;;  %v468_v33 = vmul.f32 %v1121_v30, %v461_v32  ;;  %v469_v5 = vmul.f32 %v1126_v31, %v459_v26  ;;  %870 = vmatprep.subr.bf16.mxu1 %v869_v15 }
 0x248   :  { %872 = vmatpush1.bf16.msra.mxu1 %v871_v18  ;;  %v1572_v58 = vpack.c.bf16 %v1367_v7, %v1361_v60 }
 0x249   :  { %v503_v57 = vpop.permute.xlu0 %502  ;;  %v481_v59 = vpop.permute.xlu1 %480  ;;  %v873_v61 = vpack.c.bf16 %v469_v5, %v467_v12  ;;  %v875_v27 = vpack.c.bf16 %v468_v33, %v466_v24 }
 0x24a   :  { %v506_v62 = vsel %vm129_vm5, %v499_v29, %v503_v57  ;;  %v508_v28 = vsel %vm129_vm5, %v503_v57, %v499_v29  ;;  %v483_v50 = vsel %vm103_vm4, %v477_v34, %v481_v59  ;;  %v485_v30 = vsel %vm103_vm4, %v481_v59, %v477_v34 }
 0x24b   :  { %v514_v31 = vmul.f32 %v1197_v11, %v508_v28  ;;  %v515_v51 = vmul.f32 %v1202_v14, %v506_v62  ;;  %v492_v15 = vmul.f32 %v1154_v48, %v485_v30  ;;  %v493_v18 = vmul.f32 %v1159_v49, %v483_v50  ;;  %874 = vmatprep.subr.bf16.mxu1 %v873_v61 }
 0x24c   :  { %876 = vmatpush1.bf16.msra.mxu1 %v875_v27 }
 0x24d   :  { %v599_v63 = vpop.permute.xlu0 %598  ;;  %v505_v19 = vpop.permute.xlu1 %504  ;;  %v877_v24 = vpack.c.bf16 %v493_v18, %v491_v17  ;;  %v879_v29 = vpack.c.bf16 %v492_v15, %v490_v16  ;;  %v1573_v17 = vpack.c.bf16 %v1365_v6, %v1359_v56 }
 0x24e   :  { %v507_v12 = vsel %vm129_vm5, %v501_v40, %v505_v19  ;;  %v509_v34 = vsel %vm129_vm5, %v505_v19, %v501_v40  ;;  %v660_v19 = vld [vmem:[#allocation2 + $0x120] sm:$0x1] }
 0x24f   :  { %v516_v11 = vmul.f32 %v1187_v8, %v509_v34  ;;  %v517_v14 = vmul.f32 %v1192_v10, %v507_v12  ;;  %878 = vmatprep.subr.bf16.mxu1 %v877_v24  ;;  %v622_v24 = vld [vmem:[#allocation3 + $0x40] sm:$0x3] }
 0x250   :  { %880 = vmatpush1.bf16.msra.mxu1 %v879_v29 }
 0x251   :  { %v531_v48 = vpop.permute.xlu0 %530  ;;  %v601_v49 = vpop.permute.xlu1 %600  ;;  %v881_v13 = vpack.c.bf16 %v517_v14, %v515_v51  ;;  %v883_v45 = vpack.c.bf16 %v516_v11, %v514_v31 }
 0x252   :  { %v534_v52 = vsel %vm159_vm6, %v1436_v39, %v531_v48  ;;  %v536_v53 = vsel %vm159_vm6, %v531_v48, %v1436_v39 }
 0x253   :  { %v542_v40 = vmul.f32 %v1230_v37, %v534_v52  ;;  %v543_v8 = vmul.f32 %v1235_v38, %v536_v53  ;;  %882 = vmatprep.subr.bf16.mxu1 %v881_v13 }
 0x254   :  { %884 = vmatpush1.bf16.msra.mxu1 %v883_v45 }
 0x255   :  { %v555_v10 = vpop.permute.xlu0 %554  ;;  %v533_v25 = vpop.permute.xlu1 %532  ;;  %886 = vmatprep.subr.bf16.mxu1 %v1572_v58 }
 0x256   :  { %v558_v26 = vsel %vm185_vm7, %v1438_v41, %v555_v10  ;;  %v560_v39 = vsel %vm185_vm7, %v555_v10, %v1438_v41  ;;  %v535_v37 = vsel %vm159_vm6, %v1440_v42, %v533_v25  ;;  %v537_v38 = vsel %vm159_vm6, %v533_v25, %v1440_v42 }
 0x257   :  { %v566_v32 = vmul.f32 %v1269_v1, %v558_v26  ;;  %v567_v60 = vmul.f32 %v1274_v3, %v560_v39  ;;  %v544_v7 = vmul.f32 %v1220_v35, %v535_v37  ;;  %v545_v16 = vmul.f32 %v1225_v36, %v537_v38 }
 0x258   :  { %888 = vmatpush1.bf16.msra.mxu1 %v1573_v17 }
 0x259   :  { %v579_v41 = vpop.permute.xlu0 %578  ;;  %v557_v33 = vpop.permute.xlu1 %556  ;;  %v889_v5 = vpack.c.bf16 %v545_v16, %v543_v8  ;;  %v891_v57 = vpack.c.bf16 %v544_v7, %v542_v40 }
 0x25a   :  { %v582_v42 = vsel %vm211_vm8, %v1442_v43, %v579_v41  ;;  %v584_v1 = vsel %vm211_vm8, %v579_v41, %v1442_v43  ;;  %v559_v35 = vsel %vm185_vm7, %v1444_v44, %v557_v33  ;;  %v561_v36 = vsel %vm185_vm7, %v557_v33, %v1444_v44 }
 0x25b   :  { %v590_v3 = vmul.f32 %v1302_v22, %v582_v42  ;;  %v591_v56 = vmul.f32 %v1307_v23, %v584_v1  ;;  %v568_v6 = vmul.f32 %v1259_v54, %v559_v35  ;;  %v569_v59 = vmul.f32 %v1264_v55, %v561_v36  ;;  %890 = vmatprep.subr.bf16.mxu1 %v889_v5 }
 0x25c   :  { %892 = vmatpush1.bf16.msra.mxu1 %v891_v57 }
 0x25d   :  { %v603_v61 = vpop.permute.xlu0 %602  ;;  %v581_v43 = vpop.permute.xlu1 %580  ;;  %v893_v27 = vpack.c.bf16 %v569_v59, %v567_v60  ;;  %v895_v62 = vpack.c.bf16 %v568_v6, %v566_v32 }
 0x25e   :  { %v606_v28 = vsel %vm237_vm9, %v599_v63, %v603_v61  ;;  %v608_v44 = vsel %vm237_vm9, %v603_v61, %v599_v63  ;;  %v583_v22 = vsel %vm211_vm8, %v1446_v4, %v581_v43  ;;  %v585_v54 = vsel %vm211_vm8, %v581_v43, %v1446_v4 }
 0x25f   :  { %v614_v55 = vmul.f32 %v1335_v0, %v606_v28  ;;  %v615_v23 = vmul.f32 %v1340_v2, %v608_v44  ;;  %v592_v50 = vmul.f32 %v1292_v20, %v583_v22  ;;  %v593_v30 = vmul.f32 %v1297_v21, %v585_v54  ;;  %894 = vmatprep.subr.bf16.mxu1 %v893_v27  ;;  %v661_v21 = vld [vmem:[#allocation2 + $0x128] sm:$0x1] }
 0x260   :  { %896 = vmatpush1.bf16.msra.mxu1 %v895_v62 }
 0x261   :  { %v605_v31 = vpop.permute.xlu1 %604  ;;  %v897_v51 = vpack.c.bf16 %v593_v30, %v591_v56  ;;  %v899_v15 = vpack.c.bf16 %v592_v50, %v590_v3 }
 0x262   :  { %v607_v18 = vsel %vm237_vm9, %v601_v49, %v605_v31  ;;  %v609_v63 = vsel %vm237_vm9, %v605_v31, %v601_v49 }
 0x263   :  { %v616_v4 = vmul.f32 %v1325_v46, %v607_v18  ;;  %v617_v0 = vmul.f32 %v1330_v47, %v609_v63  ;;  %898 = vmatprep.subr.bf16.mxu1 %v897_v51 }
 0x264   :  { %900 = vmatpush1.bf16.msra.mxu1 %v899_v15 }
 0x265   :  { %v901_v20 = vpack.c.bf16 %v617_v0, %v615_v23  ;;  %v903_v2 = vpack.c.bf16 %v616_v4, %v614_v55 }
 0x267   :  { %902 = vmatprep.subr.bf16.mxu1 %v901_v20 }
 0x268   :  { %904 = vmatpush1.bf16.msra.mxu1 %v903_v2 }
 0x269   :  { %829 = vmatprep.subr.msk.mxu1 %vm314_vm10, %v661_v21 }
 0x26c   :  { %830 = vmatpush1.msk.msra.mxu1 %vm314_vm10, %v660_v19 }
 0x26d   :  { %736 = vmatmul.mubr.f32.vlgmr.msra.gmra.mrb[0].mxu1 %v622_v24 }
 0x340   :  { %v737_v9 = vpop.f32.mrb[0].mxu1 }
 0x341   :  { %v742_v29 = vmul.f32 0.5, %v737_v9  ;;  %v739_v12 = vpop.f32.mrb[1].mxu1 }
 0x342   :  { %v743_v46 = vmul.f32 0.5, %v739_v12 }
 0x343   :  { %916 = vtanh.f32 %v742_v29 }
 0x344   :  { %918 = vtanh.f32 %v743_v46 }
 0x34d   :  { %v917_v47 = vpop.eup %916 }
 0x34e   :  { %v919_v34 = vpop.eup %918  ;;  %v746_v11 = vmul.f32 0.5, %v917_v47 }
 0x34f   :  { %v747_v14 = vmul.f32 0.5, %v919_v34 }
 0x350   :  { %v748_v48 = vadd.f32 0.5, %v746_v11 }
 0x351   :  { %v749_v49 = vadd.f32 0.5, %v747_v14 }
 0x353   :  { %v752_v13 = vcombine.low %v748_v48, %v749_v49 }
 0x355   :  { %832 = vst.sshfl [vmem:[%s1571_s4] sm:$0x33 pattern:$0x76325410] %v752_v13 }
 0x356   :  { %766 = vsyncpa [#allocation4], 1 }

</bundles_post_ra>
